<compile_context>
chip_gen: v5e
topology: v5e:2x2
jax: 0.10.0
libtpu: 0.0.40
codegen_flags: <defaults>
</compile_context>

<pallas_src>
import jax
import jax.numpy as jnp
from jax.experimental import pallas as pl
from jax.experimental.pallas import tpu as pltpu

NUM_ACTION_TYPES = 5
NUM_RAISE_CLASSES = 100
NUM_DISCARD_CLASSES = 3
HEAD_DIM = NUM_ACTION_TYPES + NUM_RAISE_CLASSES + NUM_DISCARD_CLASSES        # 108
HEAD_DIM_PADDED = ((HEAD_DIM + 127) // 128) * 128                            # 128


def _round_up(n, m):
    return ((n + m - 1) // m) * m


# ----------------------------- hardware hints ------------------------------

def _tpu_device_kind():
    try:
        return jax.devices()[0].device_kind.lower()
    except Exception:
        return ""


def _num_tensorcores(kind=None):
    """TensorCores per chip: 2 on v7x (and v4/v5p megacore), else assume 1."""
    kind = _tpu_device_kind() if kind is None else kind
    return 2 if any(t in kind for t in ("v7", "v4", "v5p")) else 1


def _supports_bf16_elementwise(kind=None):
    """v6e/v7x VPUs have bf16 elementwise; v5e (and unknown) -> stay f32."""
    kind = _tpu_device_kind() if kind is None else kind
    return any(t in kind for t in ("v6", "v7"))


# -------------------------------- kernel -----------------------------------

def _policy_kernel(x_ref,
                   w1_ref, b1_ref,
                   w2_ref, b2_ref,
                   wh_ref, bh_ref,
                   out_ref):
    cdt = w1_ref.dtype          # matmul operand dtype (bf16)
    ewt = b1_ref.dtype          # elementwise dtype (bf16 on v6e/v7x, f32 on v5e)

    # x arrives already cast + column-padded by the wrapper (no in-kernel cast).
    h1 = jnp.dot(x_ref[...], w1_ref[...], preferred_element_type=ewt) + b1_ref[...]
    h1 = jnp.maximum(h1, 0.0).astype(cdt)

    h2 = jnp.dot(h1, w2_ref[...], preferred_element_type=ewt) + b2_ref[...]
    h2 = jnp.maximum(h2, 0.0).astype(cdt)

    # Single fused head matmul -> lane-dense (TB, 128) output slab.
    out = jnp.dot(h2, wh_ref[...], preferred_element_type=jnp.float32) + bh_ref[...]
    out_ref[...] = out.astype(out_ref.dtype)


# ------------------------------- packing -----------------------------------

def pack_policy_params(params, compute_dtype=jnp.bfloat16, elementwise_dtype=None):
    """Fuse the 3 heads into one padded weight/bias, pad w1 rows to a 128-multiple
    input dim, and cast to the kernel's compute/elementwise dtypes."""
    if elementwise_dtype is None:
        elementwise_dtype = (jnp.bfloat16 if _supports_bf16_elementwise()
                             else jnp.float32)

    w1 = params["w1"]
    in_dim = w1.shape[0]
    k_pad = _round_up(in_dim, 128)
    w1 = jnp.pad(w1, ((0, k_pad - in_dim), (0, 0)))                   # (K_pad, H)

    wh = jnp.concatenate([params["wa"], params["wr"], params["wd"]], axis=1)  # (H,108)
    bh = jnp.concatenate([params["ba"], params["br"], params["bd"]], axis=1)  # (1,108)
    pad = HEAD_DIM_PADDED - HEAD_DIM
    wh = jnp.pad(wh, ((0, 0), (0, pad)))
    bh = jnp.pad(bh, ((0, 0), (0, pad)))

    return dict(
        w1=w1.astype(compute_dtype),
        b1=params["b1"].astype(elementwise_dtype),
        w2=params["w2"].astype(compute_dtype),
        b2=params["b2"].astype(elementwise_dtype),
        wh=wh.astype(compute_dtype),
        bh=bh.astype(jnp.float32),        # final bias add stays f32 (tiny, best precision)
    )


# ------------------------------- forward -----------------------------------

def policy_network_forward(x, packed, *, block_b=4096, out_dtype=jnp.bfloat16):
    """x: (B, input_dim). packed: output of pack_policy_params.

    Returns the fused (B, 128) logits slab (columns 0:5 action, 5:105 raise,
    105:108 discard, 108:128 zero padding).  Use split_policy_logits() in the
    consumer to slice, so XLA fuses the slice into whatever follows.
    """
    B = x.shape[0]
    w1, b1 = packed["w1"], packed["b1"]
    w2, b2 = packed["w2"], packed["b2"]
    wh, bh = packed["wh"], packed["bh"]
    k_pad, hidden = w1.shape
    compute_dtype = w1.dtype

    # Prepare x in the wrapper: cast to the matmul dtype (halves x DMA) and pad
    # the feature axis to K_pad (unmasked vld / clean MXU contraction).
    x_in = x if x.dtype == compute_dtype else x.astype(compute_dtype)
    if x_in.shape[1] != k_pad:
        x_in = jnp.pad(x_in, ((0, 0), (0, k_pad - x_in.shape[1])))

    # ---- batch tile selection -------------------------------------------
    TB = _round_up(min(block_b, _round_up(B, 8)), 8)

    # v7x (and other megacore chips): make sure the grid has >= num_tc steps so
    # the "parallel" axis actually shards across the TensorCores.
    num_tc = _num_tensorcores()
    if num_tc > 1:
        TB = min(TB, max(8, _round_up(pl.cdiv(B, num_tc), 8)))

    w_bytes = sum(int(v.size) * v.dtype.itemsize for v in packed.values())
    out_itemsize = jnp.dtype(out_dtype).itemsize

    def _est_vmem(tb):
        return (2 * tb * k_pad * x_in.dtype.itemsize            # x, double-buffered
                + 2 * tb * HEAD_DIM_PADDED * out_itemsize        # out, double-buffered
                + 2 * w_bytes                                    # resident weights
                + 4 * tb * hidden * 4                            # h1/h2 temps (f32 worst case)
                + (2 << 20))                                     # slack

    # Keep the working set comfortably inside every generation's VMEM.
    while TB > 512 and _est_vmem(TB) > (48 << 20):
        TB = max(512, _round_up(TB // 2, 8))
    vmem_limit = int(min(max(_est_vmem(TB), 32 << 20), 64 << 20))

    grid = (pl.cdiv(B, TB),)

    def rows(i):        # x / output: tile over batch rows
        return (i, 0)

    def resident(i):    # weights / biases: same block every step -> stay in VMEM
        return (0, 0)

    flops = 2 * B * (k_pad * hidden + hidden * hidden + hidden * HEAD_DIM_PADDED)
    bytes_accessed = (int(x_in.size) * x_in.dtype.itemsize
                      + w_bytes
                      + B * HEAD_DIM_PADDED * out_itemsize)

    return pl.pallas_call(
        _policy_kernel,
        out_shape=jax.ShapeDtypeStruct((B, HEAD_DIM_PADDED), out_dtype),
        grid=grid,
        in_specs=[
            pl.BlockSpec((TB, k_pad), rows),
            pl.BlockSpec(w1.shape, resident),
            pl.BlockSpec(b1.shape, resident),
            pl.BlockSpec(w2.shape, resident),
            pl.BlockSpec(b2.shape, resident),
            pl.BlockSpec(wh.shape, resident),
            pl.BlockSpec(bh.shape, resident),
        ],
        out_specs=pl.BlockSpec((TB, HEAD_DIM_PADDED), rows),
        compiler_params=pltpu.CompilerParams(
            dimension_semantics=("parallel",),
            vmem_limit_bytes=vmem_limit,
        ),
        cost_estimate=pl.CostEstimate(
            flops=flops, transcendentals=0, bytes_accessed=bytes_accessed
        ),
    )(x_in, w1, b1, w2, b2, wh, bh)


def split_policy_logits(fused):
    """Slice the fused (B, 128) slab into the three per-head logit arrays.
    Call this in the consumer (next to its softmax/argmax) rather than eagerly."""
    return (fused[:, :NUM_ACTION_TYPES],
            fused[:, NUM_ACTION_TYPES:NUM_ACTION_TYPES + NUM_RAISE_CLASSES],
            fused[:, NUM_ACTION_TYPES + NUM_RAISE_CLASSES:HEAD_DIM])


def policy_network_forward_auto(x, packed, *, min_pallas_batch=512, **kwargs):
    """Dispatch: tiny batches go to plain XLA (a single-tile Pallas call is
    dominated by call overhead); large batches go to the Pallas kernel."""
    if x.shape[0] < min_pallas_batch:
        return _reference_forward_packed(
            x, packed, out_dtype=kwargs.get("out_dtype", jnp.bfloat16))
    return policy_network_forward(x, packed, **kwargs)


# ---------------------------- init / references ----------------------------

def init_policy_params(key, input_dim, hidden_dim=128,
                       num_action_types=NUM_ACTION_TYPES,
                       num_raise_classes=NUM_RAISE_CLASSES,
                       num_discard_classes=NUM_DISCARD_CLASSES):
    """Deterministic synthetic init (matches nn.Linear default distribution).
    Weights stored pre-transposed as (in, out); biases as (1, out) rows."""
    ks = jax.random.split(key, 10)

    def lin(kw, kb, fan_in, fan_out):
        bound = 1.0 / jnp.sqrt(jnp.float32(fan_in))
        w = jax.random.uniform(kw, (fan_in, fan_out), jnp.float32, -bound, bound)
        b = jax.random.uniform(kb, (1, fan_out), jnp.float32, -bound, bound)
        return w, b

    w1, b1 = lin(ks[0], ks[1], input_dim, hidden_dim)
    w2, b2 = lin(ks[2], ks[3], hidden_dim, hidden_dim)
    wa, ba = lin(ks[4], ks[5], hidden_dim, num_action_types)
    wr, br = lin(ks[6], ks[7], hidden_dim, num_raise_classes)
    wd, bd = lin(ks[8], ks[9], hidden_dim, num_discard_classes)
    return dict(w1=w1, b1=b1, w2=w2, b2=b2,
                wa=wa, ba=ba, wr=wr, br=br, wd=wd, bd=bd)


def _reference_forward_f32(x, p):
    """Pure-f32 reference matching the PyTorch module semantics."""
    h1 = jnp.maximum(x @ p["w1"] + p["b1"], 0.0)
    h2 = jnp.maximum(h1 @ p["w2"] + p["b2"], 0.0)
    return (h2 @ p["wa"] + p["ba"],
            h2 @ p["wr"] + p["br"],
            h2 @ p["wd"] + p["bd"])


def _reference_forward_packed(x, packed, out_dtype=jnp.bfloat16):
    """Pure-JAX reference using exactly the kernel's dtype path; returns fused slab."""
    cdt = packed["w1"].dtype
    ewt = packed["b1"].dtype
    k_pad = packed["w1"].shape[0]
    xx = x.astype(cdt)
    if xx.shape[1] != k_pad:
        xx = jnp.pad(xx, ((0, 0), (0, k_pad - xx.shape[1])))
    h1 = jnp.maximum(jnp.dot(xx, packed["w1"], preferred_element_type=ewt)
                     + packed["b1"], 0.0).astype(cdt)
    h2 = jnp.maximum(jnp.dot(h1, packed["w2"], preferred_element_type=ewt)
                     + packed["b2"], 0.0).astype(cdt)
    fused = (jnp.dot(h2, packed["wh"], preferred_element_type=jnp.float32)
             + packed["bh"])
    return fused.astype(out_dtype)


# --------------------------------- demo ------------------------------------

if __name__ == "__main__":
    key = jax.random.PRNGKey(0)
    k_params, k_x1, k_x2 = jax.random.split(key, 3)

    input_dim = 32
    hidden_dim = 128

    params = init_policy_params(k_params, input_dim, hidden_dim)
    packed = pack_policy_params(params)   # bf16 matmuls; elementwise dtype auto per chip

    # ---- small single-tile check (B=8) -----------------------------------
    x_small = jax.random.normal(k_x1, (8, input_dim), jnp.float32)
    fused_small = jax.block_until_ready(policy_network_forward(x_small, packed))
    assert fused_small.shape == (8, HEAD_DIM_PADDED)

    a_l, r_l, d_l = split_policy_logits(fused_small)
    assert a_l.shape == (8, NUM_ACTION_TYPES)
    assert r_l.shape == (8, NUM_RAISE_CLASSES)
    assert d_l.shape == (8, NUM_DISCARD_CLASSES)

    # Exact-path check: same dtype path in pure JAX.
    ref_small = _reference_forward_packed(x_small, packed)
    assert jnp.allclose(fused_small[:, :HEAD_DIM].astype(jnp.float32),
                        ref_small[:, :HEAD_DIM].astype(jnp.float32),
                        atol=3e-2, rtol=3e-2)

    # Semantics check vs. full-f32 PyTorch-equivalent reference (bf16 operands
    # and bf16 output slab -> looser tolerance).
    ref_a, ref_r, ref_d = _reference_forward_f32(x_small, params)
    assert jnp.allclose(a_l.astype(jnp.float32), ref_a, atol=1e-1, rtol=1e-1)
    assert jnp.allclose(r_l.astype(jnp.float32), ref_r, atol=1e-1, rtol=1e-1)
    assert jnp.allclose(d_l.astype(jnp.float32), ref_d, atol=1e-1, rtol=1e-1)

    # ---- multi-tile check (B=300, block_b=128 -> 3 grid steps, remainder) --
    x_med = jax.random.normal(k_x2, (300, input_dim), jnp.float32)
    fused_med = jax.block_until_ready(
        policy_network_forward(x_med, packed, block_b=128))
    assert fused_med.shape == (300, HEAD_DIM_PADDED)
    ref_med = _reference_forward_packed(x_med, packed)
    assert jnp.allclose(fused_med[:, :HEAD_DIM].astype(jnp.float32),
                        ref_med[:, :HEAD_DIM].astype(jnp.float32),
                        atol=3e-2, rtol=3e-2)

    print("KERNEL_OK")
</pallas_src>

<mosaic_0001>
module attributes {stable_mosaic.version = 11 : i64} {
  func.func @_policy_kernel(%arg0: i32, %arg1: memref<8x128xbf16, #tpu.memory_space<vmem>>, %arg2: memref<128x128xbf16, #tpu.memory_space<vmem>>, %arg3: memref<1x128xf32, #tpu.memory_space<vmem>>, %arg4: memref<128x128xbf16, #tpu.memory_space<vmem>>, %arg5: memref<1x128xf32, #tpu.memory_space<vmem>>, %arg6: memref<128x128xbf16, #tpu.memory_space<vmem>>, %arg7: memref<1x128xf32, #tpu.memory_space<vmem>>, %arg8: memref<8x128xbf16, #tpu.memory_space<vmem>>) attributes {dimension_semantics = [#tpu.dimension_semantics<parallel>], iteration_bounds = array<i64: 1>, scalar_prefetch = 0 : i64, scratch_operands = 0 : i64, tpu.core_type = #tpu.core_type<tc>, window_params = [{transform_indices = @transform_0, window_bounds = array<i64: 8, 128>}, {pipeline_mode = #tpu.pipeline_mode<synchronous>, transform_indices = @transform_1, window_bounds = array<i64: 128, 128>}, {pipeline_mode = #tpu.pipeline_mode<synchronous>, transform_indices = @transform_2, window_bounds = array<i64: 1, 128>}, {pipeline_mode = #tpu.pipeline_mode<synchronous>, transform_indices = @transform_3, window_bounds = array<i64: 128, 128>}, {pipeline_mode = #tpu.pipeline_mode<synchronous>, transform_indices = @transform_4, window_bounds = array<i64: 1, 128>}, {pipeline_mode = #tpu.pipeline_mode<synchronous>, transform_indices = @transform_5, window_bounds = array<i64: 128, 128>}, {pipeline_mode = #tpu.pipeline_mode<synchronous>, transform_indices = @transform_6, window_bounds = array<i64: 1, 128>}, {transform_indices = @transform_7, window_bounds = array<i64: 8, 128>}]} {
    %c0 = arith.constant 0 : index
    %c0_0 = arith.constant 0 : index
    %0 = vector.load %arg1[%c0, %c0_0] : memref<8x128xbf16, #tpu.memory_space<vmem>>, vector<8x128xbf16>
    %c0_1 = arith.constant 0 : index
    %c0_2 = arith.constant 0 : index
    %1 = vector.load %arg2[%c0_1, %c0_2] : memref<128x128xbf16, #tpu.memory_space<vmem>>, vector<128x128xbf16>
    %cst = arith.constant dense<0.000000e+00> : vector<8x128xf32>
    %2 = tpu.matmul %0, %1, %cst {dimension_numbers = #tpu.dot_dimension_numbers<[1], [0], [0], [1], [0, 0, 1, 1], [], []>} : vector<8x128xbf16>, vector<128x128xbf16>, vector<8x128xf32> -> vector<8x128xf32>
    %c0_3 = arith.constant 0 : index
    %c0_4 = arith.constant 0 : index
    %3 = vector.load %arg3[%c0_3, %c0_4] : memref<1x128xf32, #tpu.memory_space<vmem>>, vector<1x128xf32>
    %4 = vector.broadcast %3 : vector<1x128xf32> to vector<8x128xf32>
    %5 = arith.addf %2, %4 : vector<8x128xf32>
    %cst_5 = arith.constant 0.000000e+00 : f32
    %6 = vector.broadcast %cst_5 : f32 to vector<8x128xf32>
    %7 = arith.maximumf %5, %6 : vector<8x128xf32>
    %8 = arith.truncf %7 : vector<8x128xf32> to vector<8x128xbf16>
    %c0_6 = arith.constant 0 : index
    %c0_7 = arith.constant 0 : index
    %9 = vector.load %arg4[%c0_6, %c0_7] : memref<128x128xbf16, #tpu.memory_space<vmem>>, vector<128x128xbf16>
    %cst_8 = arith.constant dense<0.000000e+00> : vector<8x128xf32>
    %10 = tpu.matmul %8, %9, %cst_8 {dimension_numbers = #tpu.dot_dimension_numbers<[1], [0], [0], [1], [0, 0, 1, 1], [], []>} : vector<8x128xbf16>, vector<128x128xbf16>, vector<8x128xf32> -> vector<8x128xf32>
    %c0_9 = arith.constant 0 : index
    %c0_10 = arith.constant 0 : index
    %11 = vector.load %arg5[%c0_9, %c0_10] : memref<1x128xf32, #tpu.memory_space<vmem>>, vector<1x128xf32>
    %12 = vector.broadcast %11 : vector<1x128xf32> to vector<8x128xf32>
    %13 = arith.addf %10, %12 : vector<8x128xf32>
    %cst_11 = arith.constant 0.000000e+00 : f32
    %14 = vector.broadcast %cst_11 : f32 to vector<8x128xf32>
    %15 = arith.maximumf %13, %14 : vector<8x128xf32>
    %16 = arith.truncf %15 : vector<8x128xf32> to vector<8x128xbf16>
    %c0_12 = arith.constant 0 : index
    %c0_13 = arith.constant 0 : index
    %17 = vector.load %arg6[%c0_12, %c0_13] : memref<128x128xbf16, #tpu.memory_space<vmem>>, vector<128x128xbf16>
    %cst_14 = arith.constant dense<0.000000e+00> : vector<8x128xf32>
    %18 = tpu.matmul %16, %17, %cst_14 {dimension_numbers = #tpu.dot_dimension_numbers<[1], [0], [0], [1], [0, 0, 1, 1], [], []>} : vector<8x128xbf16>, vector<128x128xbf16>, vector<8x128xf32> -> vector<8x128xf32>
    %c0_15 = arith.constant 0 : index
    %c0_16 = arith.constant 0 : index
    %19 = vector.load %arg7[%c0_15, %c0_16] : memref<1x128xf32, #tpu.memory_space<vmem>>, vector<1x128xf32>
    %20 = vector.broadcast %19 : vector<1x128xf32> to vector<8x128xf32>
    %21 = arith.addf %18, %20 : vector<8x128xf32>
    %22 = arith.truncf %21 : vector<8x128xf32> to vector<8x128xbf16>
    %c0_17 = arith.constant 0 : index
    %c0_18 = arith.constant 0 : index
    %23 = vector.load %arg8[%c0_17, %c0_18] : memref<8x128xbf16, #tpu.memory_space<vmem>>, vector<8x128xbf16>
    tpu.vector_store %arg8[%c0_17, %c0_18], %22 {strides = array<i32>} : memref<8x128xbf16, #tpu.memory_space<vmem>>, vector<8x128xbf16>,
    return
  }
  func.func @transform_0(%arg0: i32) -> (i32, i32) {
    %c0_i32 = arith.constant 0 : i32
    %c0_i32_0 = arith.constant 0 : i32
    return %arg0, %c0_i32 : i32, i32
  }
  func.func @transform_1(%arg0: i32) -> (i32, i32) {
    %c0_i32 = arith.constant 0 : i32
    %c0_i32_0 = arith.constant 0 : i32
    %c0_i32_1 = arith.constant 0 : i32
    return %c0_i32, %c0_i32_0 : i32, i32
  }
  func.func @transform_2(%arg0: i32) -> (i32, i32) {
    %c0_i32 = arith.constant 0 : i32
    %c0_i32_0 = arith.constant 0 : i32
    %c0_i32_1 = arith.constant 0 : i32
    return %c0_i32, %c0_i32_0 : i32, i32
  }
  func.func @transform_3(%arg0: i32) -> (i32, i32) {
    %c0_i32 = arith.constant 0 : i32
    %c0_i32_0 = arith.constant 0 : i32
    %c0_i32_1 = arith.constant 0 : i32
    return %c0_i32, %c0_i32_0 : i32, i32
  }
  func.func @transform_4(%arg0: i32) -> (i32, i32) {
    %c0_i32 = arith.constant 0 : i32
    %c0_i32_0 = arith.constant 0 : i32
    %c0_i32_1 = arith.constant 0 : i32
    return %c0_i32, %c0_i32_0 : i32, i32
  }
  func.func @transform_5(%arg0: i32) -> (i32, i32) {
    %c0_i32 = arith.constant 0 : i32
    %c0_i32_0 = arith.constant 0 : i32
    %c0_i32_1 = arith.constant 0 : i32
    return %c0_i32, %c0_i32_0 : i32, i32
  }
  func.func @transform_6(%arg0: i32) -> (i32, i32) {
    %c0_i32 = arith.constant 0 : i32
    %c0_i32_0 = arith.constant 0 : i32
    %c0_i32_1 = arith.constant 0 : i32
    return %c0_i32, %c0_i32_0 : i32, i32
  }
  func.func @transform_7(%arg0: i32) -> (i32, i32) {
    %c0_i32 = arith.constant 0 : i32
    %c0_i32_0 = arith.constant 0 : i32
    return %arg0, %c0_i32 : i32, i32
  }
}

</mosaic_0001>

<bundles_post_ra>
// kernel: tpu_custom_call.1
= control target key start
LH: loop header
LB: loop body
LE: loop exit
PB: predicated region body
PF: predicated region fallthrough
CT: control target
= control target key end

     0   :  { %12 = vsyncpa [#allocation3], 0  ;;  %s686_s0 = inlined_call_operand.hbm [shape: bf16[8,128], index: 0, kind: input, shape index: {}]   ;;  %s687_s1 = inlined_call_operand.hbm [shape: bf16[128,128], index: 1, kind: input, shape index: {}]   ;;  %s688_s2 = inlined_call_operand.vmem [shape: f32[1,128], index: 2, kind: input, shape index: {}]   ;;  %s689_s3 = inlined_call_operand.hbm [shape: bf16[128,128], index: 3, kind: input, shape index: {}]   ;;  %s690_s4 = inlined_call_operand.vmem [shape: f32[1,128], index: 4, kind: input, shape index: {}]   ;;  %s691_s5 = inlined_call_operand.hbm [shape: bf16[128,128], index: 5, kind: input, shape index: {}]   ;;  %s692_s6 = inlined_call_operand.vmem [shape: f32[1,128], index: 6, kind: input, shape index: {}]   ;;  %s693_s7 = inlined_call_operand.hbm [shape: bf16[8,128], index: 7, kind: output, shape index: {}]  }
   0x1   :  { %13 = vsyncpa [#allocation6], 0 }
   0x2   :  { %14 = vsyncpa [#allocation9], 0  ;;  %s31_s26 = sshll.u32 %s687_s1, 4  ;;  %s32_s26 = int_to_ptr.hbm [resolvable:$true] %s31_s26 }
   0x3   :  { %15 = vsyncpa [#allocation4], 0  ;;  %s615_s27 = smov [#allocation5]   ;;  %s21_s8 = sshll.u32 %s686_s0, 4  ;;  %s22_s8 = int_to_ptr.hbm [resolvable:$true] %s21_s8 }
   0x4   :  { %s33_s28 = sshll.u32 %s615_s27, 4  ;;  %s616_s9 = smov 64   ;;  %s34_s28 = int_to_ptr.vmem [resolvable:$true] %s33_s28 }
   0x5   :  { %s617_s10 = smov 4   ;;  %s618_s11 = smov [#allocation2]  }
   0x6   :  { %39 = dma.hbm_to_vmem [thread:$0]  %s32_s26, 1024, %s34_s28, [#allocation6], %s616_s9, %s616_s9, %s617_s10  }
   0x7   :  { %s23_s12 = sshll.u32 %s618_s11, 4  ;;  %s46_s15 = sshll.u32 %s689_s3, 4  ;;  %s24_s12 = int_to_ptr.vmem [resolvable:$true] %s23_s12  ;;  %s47_s15 = int_to_ptr.hbm [resolvable:$true] %s46_s15 }
   0x8   :  { %26 = dma.hbm_to_vmem [thread:$0]  %s22_s8, 64, %s24_s12, [#allocation3]  }
   0x9   :  { %s61_s17 = sshll.u32 %s691_s5, 4  ;;  %s619_s18 = smov [#allocation7]   ;;  %s62_s17 = int_to_ptr.hbm [resolvable:$true] %s61_s17 }
   0xa   :  { %s48_s19 = sshll.u32 %s619_s18, 4  ;;  %s620_s0 = smov [#allocation8]   ;;  %s49_s19 = int_to_ptr.vmem [resolvable:$true] %s48_s19 }
   0xb   :  { %54 = dma.hbm_to_vmem [thread:$0]  %s47_s15, 1024, %s49_s19, [#allocation6], %s616_s9, %s616_s9, %s617_s10  }
   0xc   :  { %s63_s20 = sshll.u32 %s620_s0, 4  ;;  %s64_s20 = int_to_ptr.vmem [resolvable:$true] %s63_s20 }
   0xd   :  { %69 = dma.hbm_to_vmem [thread:$0]  %s62_s17, 1024, %s64_s20, [#allocation9], %s616_s9, %s616_s9, %s617_s10  }
   0xe   :  { %607 = dma.done.wait [#allocation3], 64  }
   0xf   :  { %608 = vsyncadd [#allocation3], 4294967232 }
  0x10   :  { %609 = dma.done.wait [#allocation6], 2048  }
  0x11   :  { %610 = vsyncadd [#allocation6], 4294965248 }
  0x12   :  { %611 = dma.done.wait [#allocation9], 1024  }
  0x13   :  { %612 = vsyncadd [#allocation9], 4294966272  ;;  %v460_v0 = vld [vmem:[#allocation5 + $0x38] sm:$0xff]  ;;  %v459_v1 = vld [vmem:[#allocation5 + $0x30] sm:$0xff]  ;;  %s621_s24 = smov [#allocation10]   ;;  %s345_s28 = sshll.u32 %s693_s7, 4  ;;  %s346_s28 = int_to_ptr.hbm [resolvable:$true] %s345_s28 }
  0x14   :  { %157 = vmatpush.bf16.msra.mxu0 %v460_v0  ;;  %v468_v2 = vld [vmem:[#allocation7 + $0x38] sm:$0xff]  ;;  %v467_v3 = vld [vmem:[#allocation7 + $0x30] sm:$0xff]  ;;  %v458_v4 = vld [vmem:[#allocation5 + $0x28] sm:$0xff]  ;;  %s343_s25 = sshll.u32 %s621_s24, 4  ;;  %s344_s25 = int_to_ptr.vmem [resolvable:$true] %s343_s25 }
  0x15   :  { %240 = vmatpush.bf16.msra.mxu1 %v468_v2  ;;  %v466_v5 = vld [vmem:[#allocation7 + $0x28] sm:$0xff]  ;;  %v457_v6 = vld [vmem:[#allocation5 + $0x20] sm:$0xff]  ;;  %v456_v8 = vld [vmem:[#allocation5 + $0x18] sm:$0xff] }
  0x16   :  { %v465_v7 = vld [vmem:[#allocation7 + $0x20] sm:$0xff]  ;;  %v464_v9 = vld [vmem:[#allocation7 + $0x18] sm:$0xff]  ;;  %v455_v10 = vld [vmem:[#allocation5 + $0x10] sm:$0xff] }
  0x17   :  { %v463_v11 = vld [vmem:[#allocation7 + $0x10] sm:$0xff]  ;;  %v454_v12 = vld [vmem:[#allocation5 + $0x8] sm:$0xff]  ;;  %v453_v13 = vld [vmem:[#allocation5] sm:$0xff] }
  0x18   :  { %158 = vmatpush.bf16.msra.mxu0 %v459_v1  ;;  %v88_v14 = vld [vmem:[#allocation2] sm:$0xf]  ;;  %v462_v15 = vld [vmem:[#allocation7 + $0x8] sm:$0xff]  ;;  %v461_v16 = vld [vmem:[#allocation7] sm:$0xff] }
  0x19   :  { %241 = vmatpush.bf16.msra.mxu1 %v467_v3  ;;  %v476_v17 = vld [vmem:[#allocation8 + $0x38] sm:$0xff]  ;;  %v475_v18 = vld [vmem:[#allocation8 + $0x30] sm:$0xff]  ;;  %v474_v19 = vld [vmem:[#allocation8 + $0x28] sm:$0xff] }
  0x1a   :  { %323 = vmatpush.bf16.msra.mxu2 %v476_v17  ;;  %v473_v20 = vld [vmem:[#allocation8 + $0x20] sm:$0xff]  ;;  %v472_v21 = vld [vmem:[#allocation8 + $0x18] sm:$0xff]  ;;  %v471_v22 = vld [vmem:[#allocation8 + $0x10] sm:$0xff] }
  0x1b   :  { %v484_v23 = vld [vmem:[%s688_s2] ss:$0 sm:$0xff]  ;;  %v470_v29 = vld [vmem:[#allocation8 + $0x8] sm:$0xff]  ;;  %v469_v30 = vld [vmem:[#allocation8] sm:$0xff] }
  0x1c   :  { %159 = vmatpush.bf16.msra.mxu0 %v458_v4  ;;  %v485_v31 = vld [vmem:[%s690_s4] ss:$0 sm:$0xff] }
  0x1d   :  { %242 = vmatpush.bf16.msra.mxu1 %v466_v5  ;;  %v486_v37 = vld [vmem:[%s692_s6] ss:$0 sm:$0xff] }
  0x1e   :  { %324 = vmatpush.bf16.msra.mxu2 %v475_v18 }
  0x20   :  { %160 = vmatpush.bf16.msra.mxu0 %v457_v6 }
  0x21   :  { %243 = vmatpush.bf16.msra.mxu1 %v465_v7 }
  0x22   :  { %325 = vmatpush.bf16.msra.mxu2 %v474_v19 }
  0x24   :  { %161 = vmatpush.bf16.msra.mxu0 %v456_v8 }
  0x25   :  { %244 = vmatpush.bf16.msra.mxu1 %v464_v9 }
  0x26   :  { %326 = vmatpush.bf16.msra.mxu2 %v473_v20 }
  0x28   :  { %162 = vmatpush.bf16.msra.mxu0 %v455_v10 }
  0x29   :  { %245 = vmatpush.bf16.msra.mxu1 %v463_v11 }
  0x2a   :  { %327 = vmatpush.bf16.msra.mxu2 %v472_v21 }
  0x2c   :  { %163 = vmatpush.bf16.msra.mxu0 %v454_v12 }
  0x2d   :  { %246 = vmatpush.bf16.msra.mxu1 %v462_v15 }
  0x2e   :  { %328 = vmatpush.bf16.msra.mxu2 %v471_v22 }
  0x30   :  { %164 = vmatpush.bf16.msra.mxu0 %v453_v13 }
  0x31   :  { %247 = vmatpush.bf16.msra.mxu1 %v461_v16 }
  0x32   :  { %329 = vmatpush.bf16.msra.mxu2 %v470_v29 }
  0x33   :  { %165 = vmatmul.bf16.vlgmr.msra.gmra.mxu0 %v88_v14 }
  0x36   :  { %330 = vmatpush.bf16.msra.mxu2 %v469_v30 }
  0xb0   :  { %v166_v24 = vpop.f32.mrf.mxu0 }
  0xb1   :  { %v167_v25 = vadd.f32 %v484_v23, %v166_v24 }
  0xb3   :  { %v170_v26 = vmax.f32 %v167_v25, 0.0 }
  0xb5   :  { %v171_v27 = vpack.c.bf16 %v170_v26, %v170_v26 }
  0xb7   :  { %248 = vmatmul.bf16.vlgmr.msra.gmra.mxu1 %v171_v27 }
  0xb8   :  { %v168_v28 = vpop.f32.mrf.mxu0 }
 0x134   :  { %v249_v32 = vpop.f32.mrf.mxu1 }
 0x135   :  { %v250_v33 = vadd.f32 %v485_v31, %v249_v32 }
 0x137   :  { %v253_v34 = vmax.f32 %v250_v33, 0.0 }
 0x139   :  { %v254_v35 = vpack.c.bf16 %v253_v34, %v253_v34 }
 0x13b   :  { %331 = vmatmul.bf16.vlgmr.msra.gmra.mxu2 %v254_v35 }
 0x13c   :  { %v251_v36 = vpop.f32.mrf.mxu1 }
 0x1be   :  { %v332_v38 = vpop.f32.mrf.mxu2 }
 0x1bf   :  { %v333_v39 = vadd.f32 %v486_v37, %v332_v38 }
 0x1c1   :  { %v336_v40 = vpack.c.bf16 %v333_v39, %v333_v39 }
 0x1c3   :  { %337 = vst [vmem:[#allocation10] sm:$0xf] %v336_v40 }
 0x1c4   :  { %348 = dma.vmem_to_hbm [thread:$0]  %s344_s25, 64, %s346_s28, [#allocation4]  }
 0x1c6   :  { %v334_v41 = vpop.f32.mrf.mxu2 }
 0x1c7   :  { %613 = dma.done.wait [#allocation4], 64  }
 0x1c8   :  { %614 = vsyncadd [#allocation4], 4294967232 }
 0x1c9   :  { %353 = vsyncpa [#allocation3], 1 }
 0x1ca   :  { %354 = vsyncpa [#allocation6], 1 }
 0x1cb   :  { %355 = vsyncpa [#allocation9], 1 }
 0x1cc   :  { %356 = vsyncpa [#allocation4], 1 }

</bundles_post_ra>
